<compile_context>
chip_gen: v7x
topology: tpu7x:2x2x1
jax: 0.10.0
libtpu: 0.0.40
codegen_flags: <defaults>
</compile_context>

<pallas_src>
import functools

import jax
import jax.numpy as jnp
from jax.experimental import pallas as pl
from jax.experimental.pallas import tpu as pltpu

_LANES = 128
_MAX_TILE_ROWS = 2048  # 2048*128 elems/block; ~3.3 MiB/step over all streams


def _make_kernel(incl_self_empl: bool):
    def kernel(params_ref, y_ref, lg_ref, packed_ref, *rest):
        if incl_self_empl:
            self_ref, out_ref = rest
        else:
            (out_ref,) = rest

        # Unpack the categorical parents from the int8 bit-field (VPU only:
        # convert, AND, compare, select — no shifts needed).
        p = packed_ref[...].astype(jnp.int32)

        def bit(mask):
            return ((p & mask) != 0).astype(jnp.float32)

        dysp = bit(1)
        cough = bit(2)
        pain = bit(4)
        nasal = bit(8)
        low_f = bit(16)
        high_f = bit(32)
        anti_is1 = (p & 64) != 0
        se = self_ref[...].astype(jnp.float32) if incl_self_empl else None

        def linear(base):
            # params layout: [base]=bias, [base+1:...]=coefficients
            acc = params_ref[base] + jnp.zeros_like(dysp)
            k = base + 1
            if incl_self_empl:
                acc = acc + params_ref[k] * se
                k += 1
            acc = acc + params_ref[k + 0] * dysp
            acc = acc + params_ref[k + 1] * cough
            acc = acc + params_ref[k + 2] * pain
            acc = acc + params_ref[k + 3] * nasal
            acc = acc + params_ref[k + 4] * low_f
            acc = acc + params_ref[k + 5] * high_f
            return acc

        logit_a0 = linear(0)
        logit_a1 = linear(8)
        log_lam = jnp.where(anti_is1, logit_a1, logit_a0)

        y = y_ref[...]
        # Poisson log-pmf: y*log_lambda - exp(log_lambda) - lgamma(y+1)
        out_ref[...] = y * log_lam - jnp.exp(log_lam) - lg_ref[...]

    return kernel


def _tile_rows(n_rows: int) -> int:
    # Small inputs: one block covering the whole array (block == full array
    # dims, so the int8 (32,128) min-tile divisibility rule does not apply).
    if n_rows <= 64:
        return n_rows
    # Otherwise: EVEN number of grid steps (balanced across v7x's two
    # TensorCores), tile rows a multiple of 32 (int8 min tile), capped so the
    # double-buffered footprint stays well inside every chip's default
    # scoped-VMEM limit.
    steps = 2
    while -(-n_rows // steps) > _MAX_TILE_ROWS:
        steps += 2
    t = -(-n_rows // steps)
    return ((t + 31) // 32) * 32


@functools.partial(jax.jit, static_argnames=("outcome", "incl_self_empl"))
def days_at_home_forward(sample, bias_a0, coeff_a0, bias_a1, coeff_a1, *,
                         outcome="days_at_home", incl_self_empl=False):
    """Pallas equivalent of DaysAtHome.forward.

    sample: dict of f32 vectors of shape (B,) with keys
            outcome, 'antibiotics', 'dysp', 'cough', 'pain', 'nasal', 'fever'
            (+'self_empl' if incl_self_empl).  Categorical parents must hold
            exact integer values ({0,1}; fever in {0,1,2}) as produced by
            CustomDataset.
    bias_a0, bias_a1: f32 (1,)
    coeff_a0, coeff_a1: f32 (n_parents,)
    returns: f32 (B,) Poisson log-probabilities.
    """
    m = 7 if incl_self_empl else 6
    if coeff_a0.shape[0] < m or coeff_a1.shape[0] < m:
        raise ValueError(
            f"need at least {m} coefficients per regression "
            f"(got {coeff_a0.shape[0]} / {coeff_a1.shape[0]})")

    y = sample[outcome].astype(jnp.float32)
    B = y.shape[0]
    R = -(-B // _LANES)          # rows of 128 lanes
    Bp = R * _LANES

    def pad_rows(x):
        if Bp != B:
            x = jnp.pad(x, (0, Bp - B))
        return x.reshape(R, _LANES)

    # lgamma(y + 1) computed wrapper-side (no Mosaic lowering for lgamma).
    lg = jax.scipy.special.gammaln(y + 1.0)

    # Bit-pack the categorical parents into one int8 word per element.
    # Binary parents are assumed {0,1}-valued (CustomDataset mapping);
    # fever indicators and the antibiotics gate use exact == comparisons to
    # mirror the reference semantics.
    fever = sample["fever"]
    packed = (sample["dysp"].astype(jnp.int32)
              | (sample["cough"].astype(jnp.int32) << 1)
              | (sample["pain"].astype(jnp.int32) << 2)
              | (sample["nasal"].astype(jnp.int32) << 3)
              | ((fever == 1).astype(jnp.int32) << 4)
              | ((fever == 2).astype(jnp.int32) << 5)
              | ((sample["antibiotics"] == 1).astype(jnp.int32) << 6)
              ).astype(jnp.int8)

    feats = [pad_rows(y), pad_rows(lg.astype(jnp.float32)), pad_rows(packed)]
    if incl_self_empl:
        feats.append(pad_rows(sample["self_empl"].astype(jnp.int8)))

    # Model parameters in SMEM: [bias_a0, coeff_a0[:m], 0..., bias_a1,
    # coeff_a1[:m], 0...].  m <= 7, so the two halves never collide.
    params = jnp.zeros((16,), jnp.float32)
    params = params.at[0].set(bias_a0.astype(jnp.float32).reshape(()))
    params = params.at[1:1 + m].set(coeff_a0.astype(jnp.float32)[:m])
    params = params.at[8].set(bias_a1.astype(jnp.float32).reshape(()))
    params = params.at[9:9 + m].set(coeff_a1.astype(jnp.float32)[:m])

    tile_r = _tile_rows(R)
    grid = (-(-R // tile_r),)
    feat_spec = pl.BlockSpec((tile_r, _LANES), lambda i: (i, 0))

    bytes_per_elem = 4 + 4 + 1 + 4 + (1 if incl_self_empl else 0)
    cost = pl.CostEstimate(flops=26 * Bp,
                           transcendentals=Bp,
                           bytes_accessed=bytes_per_elem * Bp + 64)

    out = pl.pallas_call(
        _make_kernel(incl_self_empl),
        out_shape=jax.ShapeDtypeStruct((R, _LANES), jnp.float32),
        grid_spec=pltpu.PrefetchScalarGridSpec(
            num_scalar_prefetch=0,
            grid=grid,
            in_specs=[pl.BlockSpec(memory_space=pltpu.MemorySpace.SMEM)]  # params
                     + [feat_spec] * len(feats),
            out_specs=pl.BlockSpec((tile_r, _LANES), lambda i: (i, 0)),
        ),
        compiler_params=pltpu.CompilerParams(
            dimension_semantics=("parallel",)),
        cost_estimate=cost,
    )(params, *feats)

    return out.reshape(-1)[:B]


def _reference_forward(sample, bias_a0, coeff_a0, bias_a1, coeff_a1, *,
                       outcome="days_at_home", incl_self_empl=False):
    fever = sample["fever"]
    low_fever = jnp.where(fever == 1, jnp.ones_like(fever), jnp.zeros_like(fever))
    high_fever = jnp.where(fever == 2, jnp.ones_like(fever), jnp.zeros_like(fever))
    y = sample[outcome]
    if incl_self_empl:
        logit_a0 = (bias_a0 + coeff_a0[0] * sample["self_empl"]
                    + coeff_a0[1] * sample["dysp"] + coeff_a0[2] * sample["cough"]
                    + coeff_a0[3] * sample["pain"] + coeff_a0[4] * sample["nasal"]
                    + coeff_a0[5] * low_fever + coeff_a0[6] * high_fever)
        logit_a1 = (bias_a1 + coeff_a1[0] * sample["self_empl"]
                    + coeff_a1[1] * sample["dysp"] + coeff_a1[2] * sample["cough"]
                    + coeff_a1[3] * sample["pain"] + coeff_a1[4] * sample["nasal"]
                    + coeff_a1[5] * low_fever + coeff_a1[6] * high_fever)
    else:
        logit_a0 = (bias_a0 + coeff_a0[0] * sample["dysp"]
                    + coeff_a0[1] * sample["cough"] + coeff_a0[2] * sample["pain"]
                    + coeff_a0[3] * sample["nasal"] + coeff_a0[4] * low_fever
                    + coeff_a0[5] * high_fever)
        logit_a1 = (bias_a1 + coeff_a1[0] * sample["dysp"]
                    + coeff_a1[1] * sample["cough"] + coeff_a1[2] * sample["pain"]
                    + coeff_a1[3] * sample["nasal"] + coeff_a1[4] * low_fever
                    + coeff_a1[5] * high_fever)
    log_lambda = jnp.where(sample["antibiotics"] == 1, logit_a1, logit_a0)
    return (y * log_lambda - jnp.exp(log_lambda)
            - jax.scipy.special.gammaln(y + 1.0))


if __name__ == "__main__":
    key = jax.random.PRNGKey(0)
    kb0, kc0, kb1, kc1, k1, k2, k3, k4, k5, k6, ky = jax.random.split(key, 11)

    B = 256
    # parents = ['dysp','cough','pain','nasal','fever','antibiotics'] -> n = 6
    n_parents = 6

    # Deterministic parameter init (matches torch.rand shapes in __init__).
    bias_a0 = jax.random.uniform(kb0, (1,), jnp.float32)
    coeff_a0 = jax.random.uniform(kc0, (n_parents,), jnp.float32)
    bias_a1 = jax.random.uniform(kb1, (1,), jnp.float32)
    coeff_a1 = jax.random.uniform(kc1, (n_parents,), jnp.float32)

    sample = {
        "dysp":         jax.random.randint(k1, (B,), 0, 2).astype(jnp.float32),
        "cough":        jax.random.randint(k2, (B,), 0, 2).astype(jnp.float32),
        "pain":         jax.random.randint(k3, (B,), 0, 2).astype(jnp.float32),
        "nasal":        jax.random.randint(k4, (B,), 0, 2).astype(jnp.float32),
        "fever":        jax.random.randint(k5, (B,), 0, 3).astype(jnp.float32),
        "antibiotics":  jax.random.randint(k6, (B,), 0, 2).astype(jnp.float32),
        "days_at_home": jax.random.randint(ky, (B,), 0, 16).astype(jnp.float32),
    }

    log_p = days_at_home_forward(sample, bias_a0, coeff_a0, bias_a1, coeff_a1,
                                 outcome="days_at_home", incl_self_empl=False)
    jax.block_until_ready(log_p)

    ref = _reference_forward(sample, bias_a0, coeff_a0, bias_a1, coeff_a1,
                             outcome="days_at_home", incl_self_empl=False)
    assert log_p.shape == (B,)
    assert jnp.allclose(log_p, ref, atol=1e-4, rtol=1e-4)

    print("KERNEL_OK")
</pallas_src>

<mosaic_0001>
module attributes {stable_mosaic.version = 11 : i64} {
  func.func @kernel(%arg0: i32, %arg1: memref<16xf32, #tpu.memory_space<smem>>, %arg2: memref<2x128xf32, #tpu.memory_space<vmem>>, %arg3: memref<2x128xf32, #tpu.memory_space<vmem>>, %arg4: memref<2x128xi8, #tpu.memory_space<vmem>>, %arg5: memref<2x128xf32, #tpu.memory_space<vmem>>) attributes {dimension_semantics = [#tpu.dimension_semantics<parallel>], iteration_bounds = array<i64: 1>, scalar_prefetch = 0 : i64, scratch_operands = 0 : i64, tpu.core_type = #tpu.core_type<tc>, window_params = [{transform_indices = @transform_0, window_bounds = array<i64: 16>}, {transform_indices = @transform_1, window_bounds = array<i64: 2, 128>}, {transform_indices = @transform_2, window_bounds = array<i64: 2, 128>}, {transform_indices = @transform_3, window_bounds = array<i64: 2, 128>}, {transform_indices = @transform_4, window_bounds = array<i64: 2, 128>}]} {
    %c0 = arith.constant 0 : index
    %c0_0 = arith.constant 0 : index
    %0 = vector.load %arg4[%c0, %c0_0] : memref<2x128xi8, #tpu.memory_space<vmem>>, vector<2x128xi8>
    %1 = arith.extsi %0 : vector<2x128xi8> to vector<2x128xi32>
    %c1_i32 = arith.constant 1 : i32
    %2 = vector.broadcast %c1_i32 : i32 to vector<2x128xi32>
    %3 = arith.andi %1, %2 : vector<2x128xi32>
    %c0_i32 = arith.constant 0 : i32
    %4 = vector.broadcast %c0_i32 : i32 to vector<2x128xi32>
    %5 = arith.cmpi ne, %3, %4 : vector<2x128xi32>
    %6 = arith.extui %5 : vector<2x128xi1> to vector<2x128xi32>
    %7 = arith.sitofp %6 : vector<2x128xi32> to vector<2x128xf32>
    %c2_i32 = arith.constant 2 : i32
    %8 = vector.broadcast %c2_i32 : i32 to vector<2x128xi32>
    %9 = arith.andi %1, %8 : vector<2x128xi32>
    %c0_i32_1 = arith.constant 0 : i32
    %10 = vector.broadcast %c0_i32_1 : i32 to vector<2x128xi32>
    %11 = arith.cmpi ne, %9, %10 : vector<2x128xi32>
    %12 = arith.extui %11 : vector<2x128xi1> to vector<2x128xi32>
    %13 = arith.sitofp %12 : vector<2x128xi32> to vector<2x128xf32>
    %c4_i32 = arith.constant 4 : i32
    %14 = vector.broadcast %c4_i32 : i32 to vector<2x128xi32>
    %15 = arith.andi %1, %14 : vector<2x128xi32>
    %c0_i32_2 = arith.constant 0 : i32
    %16 = vector.broadcast %c0_i32_2 : i32 to vector<2x128xi32>
    %17 = arith.cmpi ne, %15, %16 : vector<2x128xi32>
    %18 = arith.extui %17 : vector<2x128xi1> to vector<2x128xi32>
    %19 = arith.sitofp %18 : vector<2x128xi32> to vector<2x128xf32>
    %c8_i32 = arith.constant 8 : i32
    %20 = vector.broadcast %c8_i32 : i32 to vector<2x128xi32>
    %21 = arith.andi %1, %20 : vector<2x128xi32>
    %c0_i32_3 = arith.constant 0 : i32
    %22 = vector.broadcast %c0_i32_3 : i32 to vector<2x128xi32>
    %23 = arith.cmpi ne, %21, %22 : vector<2x128xi32>
    %24 = arith.extui %23 : vector<2x128xi1> to vector<2x128xi32>
    %25 = arith.sitofp %24 : vector<2x128xi32> to vector<2x128xf32>
    %c16_i32 = arith.constant 16 : i32
    %26 = vector.broadcast %c16_i32 : i32 to vector<2x128xi32>
    %27 = arith.andi %1, %26 : vector<2x128xi32>
    %c0_i32_4 = arith.constant 0 : i32
    %28 = vector.broadcast %c0_i32_4 : i32 to vector<2x128xi32>
    %29 = arith.cmpi ne, %27, %28 : vector<2x128xi32>
    %30 = arith.extui %29 : vector<2x128xi1> to vector<2x128xi32>
    %31 = arith.sitofp %30 : vector<2x128xi32> to vector<2x128xf32>
    %c32_i32 = arith.constant 32 : i32
    %32 = vector.broadcast %c32_i32 : i32 to vector<2x128xi32>
    %33 = arith.andi %1, %32 : vector<2x128xi32>
    %c0_i32_5 = arith.constant 0 : i32
    %34 = vector.broadcast %c0_i32_5 : i32 to vector<2x128xi32>
    %35 = arith.cmpi ne, %33, %34 : vector<2x128xi32>
    %36 = arith.extui %35 : vector<2x128xi1> to vector<2x128xi32>
    %37 = arith.sitofp %36 : vector<2x128xi32> to vector<2x128xf32>
    %c64_i32 = arith.constant 64 : i32
    %38 = vector.broadcast %c64_i32 : i32 to vector<2x128xi32>
    %39 = arith.andi %1, %38 : vector<2x128xi32>
    %c0_i32_6 = arith.constant 0 : i32
    %40 = vector.broadcast %c0_i32_6 : i32 to vector<2x128xi32>
    %41 = arith.cmpi ne, %39, %40 : vector<2x128xi32>
    %c0_7 = arith.constant 0 : index
    %42 = memref.load %arg1[%c0_7] : memref<16xf32, #tpu.memory_space<smem>>
    %cst = arith.constant 0.000000e+00 : f32
    %43 = vector.broadcast %cst : f32 to vector<2x128xf32>
    %44 = vector.broadcast %42 : f32 to vector<2x128xf32>
    %45 = arith.addf %44, %43 : vector<2x128xf32>
    %c1 = arith.constant 1 : index
    %46 = memref.load %arg1[%c1] : memref<16xf32, #tpu.memory_space<smem>>
    %47 = vector.broadcast %46 : f32 to vector<2x128xf32>
    %48 = arith.mulf %47, %7 : vector<2x128xf32>
    %49 = arith.addf %45, %48 : vector<2x128xf32>
    %c2 = arith.constant 2 : index
    %50 = memref.load %arg1[%c2] : memref<16xf32, #tpu.memory_space<smem>>
    %51 = vector.broadcast %50 : f32 to vector<2x128xf32>
    %52 = arith.mulf %51, %13 : vector<2x128xf32>
    %53 = arith.addf %49, %52 : vector<2x128xf32>
    %c3 = arith.constant 3 : index
    %54 = memref.load %arg1[%c3] : memref<16xf32, #tpu.memory_space<smem>>
    %55 = vector.broadcast %54 : f32 to vector<2x128xf32>
    %56 = arith.mulf %55, %19 : vector<2x128xf32>
    %57 = arith.addf %53, %56 : vector<2x128xf32>
    %c4 = arith.constant 4 : index
    %58 = memref.load %arg1[%c4] : memref<16xf32, #tpu.memory_space<smem>>
    %59 = vector.broadcast %58 : f32 to vector<2x128xf32>
    %60 = arith.mulf %59, %25 : vector<2x128xf32>
    %61 = arith.addf %57, %60 : vector<2x128xf32>
    %c5 = arith.constant 5 : index
    %62 = memref.load %arg1[%c5] : memref<16xf32, #tpu.memory_space<smem>>
    %63 = vector.broadcast %62 : f32 to vector<2x128xf32>
    %64 = arith.mulf %63, %31 : vector<2x128xf32>
    %65 = arith.addf %61, %64 : vector<2x128xf32>
    %c6 = arith.constant 6 : index
    %66 = memref.load %arg1[%c6] : memref<16xf32, #tpu.memory_space<smem>>
    %67 = vector.broadcast %66 : f32 to vector<2x128xf32>
    %68 = arith.mulf %67, %37 : vector<2x128xf32>
    %69 = arith.addf %65, %68 : vector<2x128xf32>
    %c8 = arith.constant 8 : index
    %70 = memref.load %arg1[%c8] : memref<16xf32, #tpu.memory_space<smem>>
    %cst_8 = arith.constant 0.000000e+00 : f32
    %71 = vector.broadcast %cst_8 : f32 to vector<2x128xf32>
    %72 = vector.broadcast %70 : f32 to vector<2x128xf32>
    %73 = arith.addf %72, %71 : vector<2x128xf32>
    %c9 = arith.constant 9 : index
    %74 = memref.load %arg1[%c9] : memref<16xf32, #tpu.memory_space<smem>>
    %75 = vector.broadcast %74 : f32 to vector<2x128xf32>
    %76 = arith.mulf %75, %7 : vector<2x128xf32>
    %77 = arith.addf %73, %76 : vector<2x128xf32>
    %c10 = arith.constant 10 : index
    %78 = memref.load %arg1[%c10] : memref<16xf32, #tpu.memory_space<smem>>
    %79 = vector.broadcast %78 : f32 to vector<2x128xf32>
    %80 = arith.mulf %79, %13 : vector<2x128xf32>
    %81 = arith.addf %77, %80 : vector<2x128xf32>
    %c11 = arith.constant 11 : index
    %82 = memref.load %arg1[%c11] : memref<16xf32, #tpu.memory_space<smem>>
    %83 = vector.broadcast %82 : f32 to vector<2x128xf32>
    %84 = arith.mulf %83, %19 : vector<2x128xf32>
    %85 = arith.addf %81, %84 : vector<2x128xf32>
    %c12 = arith.constant 12 : index
    %86 = memref.load %arg1[%c12] : memref<16xf32, #tpu.memory_space<smem>>
    %87 = vector.broadcast %86 : f32 to vector<2x128xf32>
    %88 = arith.mulf %87, %25 : vector<2x128xf32>
    %89 = arith.addf %85, %88 : vector<2x128xf32>
    %c13 = arith.constant 13 : index
    %90 = memref.load %arg1[%c13] : memref<16xf32, #tpu.memory_space<smem>>
    %91 = vector.broadcast %90 : f32 to vector<2x128xf32>
    %92 = arith.mulf %91, %31 : vector<2x128xf32>
    %93 = arith.addf %89, %92 : vector<2x128xf32>
    %c14 = arith.constant 14 : index
    %94 = memref.load %arg1[%c14] : memref<16xf32, #tpu.memory_space<smem>>
    %95 = vector.broadcast %94 : f32 to vector<2x128xf32>
    %96 = arith.mulf %95, %37 : vector<2x128xf32>
    %97 = arith.addf %93, %96 : vector<2x128xf32>
    %98 = arith.select %41, %97, %69 : vector<2x128xi1>, vector<2x128xf32>
    %c0_9 = arith.constant 0 : index
    %c0_10 = arith.constant 0 : index
    %99 = vector.load %arg2[%c0_9, %c0_10] : memref<2x128xf32, #tpu.memory_space<vmem>>, vector<2x128xf32>
    %100 = arith.mulf %99, %98 : vector<2x128xf32>
    %101 = math.exp %98 : vector<2x128xf32>
    %102 = arith.subf %100, %101 : vector<2x128xf32>
    %c0_11 = arith.constant 0 : index
    %c0_12 = arith.constant 0 : index
    %103 = vector.load %arg3[%c0_11, %c0_12] : memref<2x128xf32, #tpu.memory_space<vmem>>, vector<2x128xf32>
    %104 = arith.subf %102, %103 : vector<2x128xf32>
    %c0_13 = arith.constant 0 : index
    %c0_14 = arith.constant 0 : index
    %105 = vector.load %arg5[%c0_13, %c0_14] : memref<2x128xf32, #tpu.memory_space<vmem>>, vector<2x128xf32>
    tpu.vector_store %arg5[%c0_13, %c0_14], %104 {strides = array<i32>} : memref<2x128xf32, #tpu.memory_space<vmem>>, vector<2x128xf32>,
    return
  }
  func.func @transform_0(%arg0: i32) -> i32 {
    %c0_i32 = arith.constant 0 : i32
    %c0_i32_0 = arith.constant 0 : i32
    return %c0_i32 : i32
  }
  func.func @transform_1(%arg0: i32) -> (i32, i32) {
    %c0_i32 = arith.constant 0 : i32
    %c0_i32_0 = arith.constant 0 : i32
    return %arg0, %c0_i32 : i32, i32
  }
  func.func @transform_2(%arg0: i32) -> (i32, i32) {
    %c0_i32 = arith.constant 0 : i32
    %c0_i32_0 = arith.constant 0 : i32
    return %arg0, %c0_i32 : i32, i32
  }
  func.func @transform_3(%arg0: i32) -> (i32, i32) {
    %c0_i32 = arith.constant 0 : i32
    %c0_i32_0 = arith.constant 0 : i32
    return %arg0, %c0_i32 : i32, i32
  }
  func.func @transform_4(%arg0: i32) -> (i32, i32) {
    %c0_i32 = arith.constant 0 : i32
    %c0_i32_0 = arith.constant 0 : i32
    return %arg0, %c0_i32 : i32, i32
  }
}

</mosaic_0001>

<bundles_post_ra>
// kernel: days_at_home_forward.1
= control target key start
LH: loop header
LB: loop body
LE: loop exit
PB: predicated region body
PF: predicated region fallthrough
CT: control target
= control target key end

     0   :  { %9 = vsyncpa [#allocation4], 0  ;;  %s293_s0 = inlined_call_operand.vmem [shape: f32[16], index: 0, kind: input, shape index: {}]   ;;  %s294_s1 = inlined_call_operand.vmem [shape: f32[2,128], index: 1, kind: input, shape index: {}]   ;;  %s295_s2 = inlined_call_operand.vmem [shape: f32[2,128], index: 2, kind: input, shape index: {}]   ;;  %s296_s3 = inlined_call_operand.vmem [shape: s8[2,128], index: 3, kind: input, shape index: {}]   ;;  %s297_s4 = inlined_call_operand.hbm [shape: f32[2,128], index: 4, kind: output, shape index: {}]  }
   0x1   :  { %10 = vsyncpa [#allocation3], 0  ;;  %s17_s17 = sshll.u32 %s293_s0, 4  ;;  %s18_s17 = int_to_ptr.vmem [resolvable:$true] %s17_s17 }
   0x2   :  { %s161_s18 = scalar_lea.vmem %s18_s17, 16  ;;  %p166_p1 = scmp.lt.s32.totalorder %s18_s17, %s18_s17 }
   0x3   :  { %p162_p0 = scmp.ne.s32.totalorder %s18_s17, %s161_s18  ;;  %p167_p2 = scmp.lt.s32.totalorder %s161_s18, %s161_s18 }
   0x5   :  { %p168_p3 = por %p167_p2, %p166_p1 }
   0x7   :  { %p169_p4 = pnand %p168_p3, %p162_p0 }
   0x9   :  { %172 = shalt.err (!%p169_p4)
}
   0xa   :  { %s199_s19 = smov [#allocation2]  }
   0xb   :  { %20 = dma.vmem_to_smem %s18_s17, 16, %s199_s19, [#allocation4]  }
   0xc   :  { %195 = dma.done.wait [#allocation4], 16  }
   0xd   :  { %196 = vsyncadd [#allocation4], 4294967280 }
   0xe   :  { %30 = sfence }
   0xf   :  { %v31_v0 = vld [vmem:[%s296_s3] sm:$0x1]  ;;  %s233_s22 = sld [smem:[#allocation2]]  ;;  %s143_s0 = sld [smem:[#allocation2 + $0x1]]  ;;  %v200_v7 = vmov 0.0  }
  0x10   :  { %v235_v1 = vunpack.c.0.s8 %v31_v0  ;;  %s144_s23 = sld [smem:[#allocation2 + $0x2]]  ;;  %s237_s24 = sld [smem:[#allocation2 + $0x3]]  ;;  %v114_v57 = vld [vmem:[%s294_s1] sm:$0x3] }
  0x11   :  { %s239_s25 = sld [smem:[#allocation2 + $0x4]]  ;;  %s245_s3 = sld [smem:[#allocation2 + $0x5]]  ;;  %v119_v60 = vld [vmem:[%s295_s2] sm:$0x3] }
  0x12   :  { %v33_v2 = vand.u32 1, %v235_v1  ;;  %v37_v3 = vand.u32 2, %v235_v1  ;;  %v41_v4 = vand.u32 4, %v235_v1  ;;  %v45_v5 = vand.u32 8, %v235_v1  ;;  %s248_s26 = sld [smem:[#allocation2 + $0x8]]  ;;  %s150_s27 = sld [smem:[#allocation2 + $0x9]] }
  0x13   :  { %v49_v6 = vand.u32 16, %v235_v1  ;;  %v53_v10 = vand.u32 32, %v235_v1  ;;  %s251_s28 = sld [smem:[#allocation2 + $0x6]]  ;;  %s151_s29 = sld [smem:[#allocation2 + $0xa]]  ;;  %v57_v49 = vand.u32 64, %v235_v1 }
  0x14   :  { %vm34_vm0 = vcmp.ne.s32.totalorder %v33_v2, 0  ;;  %vm38_vm1 = vcmp.ne.s32.totalorder %v37_v3, 0  ;;  %vm42_vm2 = vcmp.ne.s32.totalorder %v41_v4, 0  ;;  %vm46_vm3 = vcmp.ne.s32.totalorder %v45_v5, 0  ;;  %s152_s30 = sld [smem:[#allocation2 + $0xb]]  ;;  %s254_s5 = sld [smem:[#allocation2 + $0xc]] }
  0x15   :  { %v137_v8 = vsel %vm34_vm0, 1.0, %v200_v7  ;;  %v138_v9 = vsel %vm38_vm1, 1.0, %v200_v7  ;;  %v139_v11 = vsel %vm42_vm2, 1.0, %v200_v7  ;;  %v60_v12 = vstv %s233_s22  ;;  %s257_s6 = sld [smem:[#allocation2 + $0xd]]  ;;  %s260_s7 = sld [smem:[#allocation2 + $0xe]] }
  0x16   :  { %v63_v13 = vstv %s143_s0  ;;  %v67_v14 = vstv %s144_s23  ;;  %vm50_vm4 = vcmp.ne.s32.totalorder %v49_v6, 0  ;;  %v71_v17 = vstv %s237_s24  ;;  %s201_s12 = smov [#allocation5]  }
  0x17   :  { %v64_v15 = vmul.f32 %v137_v8, %v63_v13  ;;  %v68_v16 = vmul.f32 %v138_v9, %v67_v14  ;;  %v140_v18 = vsel %vm46_vm3, 1.0, %v200_v7  ;;  %v75_v19 = vstv %s239_s25  ;;  %s128_s13 = sshll.u32 %s201_s12, 4  ;;  %s129_s13 = int_to_ptr.vmem [resolvable:$true] %s128_s13 }
  0x18   :  { %vm262_vm5 = vcmp.ne.s32.totalorder %v53_v10, 0  ;;  %v72_v22 = vmul.f32 %v139_v11, %v71_v17  ;;  %v141_v23 = vsel %vm50_vm4, 1.0, %v200_v7  ;;  %v79_v24 = vstv %s245_s3  ;;  %s173_s14 = scalar_lea.vmem %s129_s13, 32  ;;  %p178_p6 = scmp.lt.s32.totalorder %s129_s13, %s129_s13 }
  0x19   :  { %v65_v21 = vadd.f32 %v64_v15, %v60_v12  ;;  %v87_v25 = vstv %s248_s26  ;;  %v90_v26 = vstv %s150_s27  ;;  %v76_v28 = vmul.f32 %v140_v18, %v75_v19  ;;  %p174_p5 = scmp.ne.s32.totalorder %s129_s13, %s173_s14  ;;  %p179_p7 = scmp.lt.s32.totalorder %s173_s14, %s173_s14 }
  0x1a   :  { %v91_v29 = vmul.f32 %v137_v8, %v90_v26  ;;  %v94_v30 = vstv %s151_s29  ;;  %v98_v32 = vstv %s152_s30  ;;  %v102_v33 = vstv %s254_s5 }
  0x1b   :  { %v69_v27 = vadd.f32 %v68_v16, %v65_v21  ;;  %v95_v31 = vmul.f32 %v138_v9, %v94_v30  ;;  %v80_v35 = vmul.f32 %v141_v23, %v79_v24  ;;  %v99_v37 = vmul.f32 %v139_v11, %v98_v32  ;;  %p180_p8 = por %p179_p7, %p178_p6 }
  0x1c   :  { %v92_v36 = vadd.f32 %v91_v29, %v87_v25  ;;  %v142_v38 = vsel %vm262_vm5, 1.0, %v200_v7  ;;  %v83_v39 = vstv %s251_s28  ;;  %v106_v40 = vstv %s257_s6 }
  0x1d   :  { %v73_v34 = vadd.f32 %v72_v22, %v69_v27  ;;  %v103_v43 = vmul.f32 %v140_v18, %v102_v33  ;;  %v110_v44 = vstv %s260_s7  ;;  %v84_v46 = vmul.f32 %v142_v38, %v83_v39  ;;  %p181_p9 = pnand %p180_p8, %p174_p5 }
  0x1e   :  { %v96_v42 = vadd.f32 %v95_v31, %v92_v36  ;;  %v107_v48 = vmul.f32 %v141_v23, %v106_v40  ;;  %v111_v51 = vmul.f32 %v142_v38, %v110_v44  ;;  %vm58_vm6 = vcmp.ne.s32.totalorder %v57_v49, 0 }
  0x1f   :  { %v77_v41 = vadd.f32 %v76_v28, %v73_v34 }
  0x20   :  { %v100_v47 = vadd.f32 %v99_v37, %v96_v42 }
  0x21   :  { %v81_v45 = vadd.f32 %v80_v35, %v77_v41 }
  0x22   :  { %v104_v50 = vadd.f32 %v103_v43, %v100_v47 }
  0x23   :  { %v85_v52 = vadd.f32 %v84_v46, %v81_v45 }
  0x24   :  { %v108_v53 = vadd.f32 %v107_v48, %v104_v50 }
  0x26   :  { %v112_v54 = vadd.f32 %v111_v51, %v108_v53 }
  0x28   :  { %v113_v55 = vsel %vm58_vm6, %v112_v54, %v85_v52 }
  0x29   :  { %v116_v56 = vmul.f32 1.442695, %v113_v55  ;;  %v115_v58 = vmul.f32 %v114_v57, %v113_v55 }
  0x2b   :  { %159 = vpow2.f32 %v116_v56 }
  0x35   :  { %v160_v59 = vpop.eup %159 }
  0x36   :  { %v118_v61 = vsub.f32 %v115_v58, %v160_v59 }
  0x38   :  { %v120_v62 = vsub.f32 %v118_v61, %v119_v60 }
  0x3a   :  { %121 = vst [vmem:[#allocation5] sm:$0x3] %v120_v62 }
  0x3b   :  { %184 = shalt.err (!%p181_p9)
}
  0x3c   :  { %s185_s16 = scalar_lea.hbm %s297_s4, 32 }
  0x3d   :  { %p186_p10 = scmp.ne.s32.totalorder %s297_s4, %s185_s16  ;;  %p189_p11 = scmp.lt.u32.totalorder %s185_s16, %s297_s4 }
  0x3f   :  { %p191_p12 = pnand %p189_p11, %p186_p10 }
  0x41   :  { %194 = shalt.err (!%p191_p12)
}
  0x42   :  { %131 = dma.vmem_to_hbm [thread:$0]  %s129_s13, 32, %s297_s4, [#allocation3]  }
  0x43   :  { %197 = dma.done.wait [#allocation3], 32  }
  0x44   :  { %198 = vsyncadd [#allocation3], 4294967264 }
  0x45   :  { %135 = vsyncpa [#allocation3], 1 }
  0x46   :  { %136 = vsyncpa [#allocation4], 1 }

</bundles_post_ra>
